<compile_context>
chip_gen: v6e
topology: v6e:2x2x1
jax: 0.10.0
libtpu: 0.0.40
codegen_flags: <defaults>
</compile_context>

<pallas_src>
import math

import jax
import jax.numpy as jnp
from jax.experimental import pallas as pl
from jax.experimental.pallas import tpu as pltpu


def up_kernel(x1_ref, x2_ref, wx1_ref, wblk_ref, b_ref, o_ref):
    """Fused ConvTranspose(2,2) + pad + cat + 1x1 Conv + BN + ReLU (folded weights).

    x1_ref  : [TM, C]        low-res features, channels-last rows (b*H1*W1 + h*W1 + w)
    x2_ref  : [TM, 4*C]      skip features, 2x2-blocked: col = (dy*2+dx)*C + c
    wx1_ref : [C, 4*Cout]    ConvT folded into conv x1-half: col = p*Cout + o
    wblk_ref: [4*C, 4*Cout]  block-diagonal conv x2-half (BN folded)
    b_ref   : [1, 4*Cout]    bias (conv bias + ConvT-bias term + BN shift), x4 p-major
    o_ref   : [TM, 4*Cout]   blocked output: col = p*Cout + o
    """
    acc = jnp.dot(x1_ref[...], wx1_ref[...], preferred_element_type=jnp.float32)
    acc = acc + jnp.dot(x2_ref[...], wblk_ref[...], preferred_element_type=jnp.float32)
    acc = acc + b_ref[...]
    o_ref[...] = jnp.maximum(acc, 0.0).astype(o_ref.dtype)


def _pick_row_tile(rows, c, cout, *, target=1024, vmem_budget=24 << 20):
    """Row tile: large enough to amortize the ~0.35us/grid-step overhead, small
    enough that the double-buffered per-step footprint stays under ~24 MiB
    (fits v7x's 64 MiB VMEM / default scoped limits everywhere), >= 2 tiles
    when rows allow so both v7x TensorCores get work, multiple of 256 (MXU
    feed) when big, else multiple of 8."""
    if rows <= 8:
        return rows
    bytes_per_row = 4 * (5 * c + 4 * cout)                  # f32 x1 + x2 + out rows
    vmem_cap = max(8, vmem_budget // (2 * bytes_per_row))   # double-buffered
    tm = min(target, vmem_cap, rows)
    half = pl.cdiv(rows, 2)
    if tm > half:                                           # keep >= 2 grid steps
        tm = half
    if tm >= 256:
        tm = (tm // 256) * 256
    else:
        tm = max(8, (tm // 8) * 8)
    return tm


def up_forward(x1, x2, params, *, row_tile=None):
    """x1: [B, C, H1, W1], x2: [B, C, 2*H1, 2*W1] (NCHW f32) -> [B, Cout, 2*H1, 2*W1]."""
    wt, bt = params["wt"], params["bt"]              # ConvTranspose2d: [C, C, 2, 2], [C]
    w2, b2 = params["w2"], params["b2"]              # 1x1 Conv2d:      [Cout, 2C], [Cout]
    gamma, beta = params["gamma"], params["beta"]    # BatchNorm2d (inference)
    mean, var, eps = params["mean"], params["var"], params["eps"]

    B, C, H1, W1 = x1.shape
    B2, C2, H2, W2 = x2.shape
    Cout = w2.shape[0]
    assert B2 == B and C2 == C
    # TODO(synk): only the exact-2x case (F.pad with diffX == diffY == 0) and the
    # default ctor branch (Upsample=True -> ConvTranspose2d) are fused here.
    assert H2 == 2 * H1 and W2 == 2 * W1, "x2 must be exactly 2x the spatial size of x1"

    # ---- fold BatchNorm (inference) and ConvTranspose into the 1x1 conv ----
    s = gamma / jnp.sqrt(var + eps)                          # [Cout]
    wa = (w2[:, :C] * s[:, None]).T                          # [C, Cout]  (x2 half)
    wb = (w2[:, C:] * s[:, None]).T                          # [C, Cout]  (upsampled-x1 half)
    bias = b2 * s + beta - mean * s + bt @ wb                # [Cout]
    wt_p = jnp.transpose(wt, (2, 3, 0, 1)).reshape(4, C, C)        # [p=dy*2+dx, ci, co]
    wcomb = jnp.einsum('pic,co->pio', wt_p, wb)                    # [p, ci, o]
    wx1 = jnp.transpose(wcomb, (1, 0, 2)).reshape(C, 4 * Cout)     # [ci, p*Cout + o]
    # Block-diagonal x2 weight: one [TM,4C]@[4C,4Cout] matmul replaces 4 dots + concat.
    wblk = jnp.einsum('pq,co->pcqo', jnp.eye(4, dtype=wa.dtype), wa
                      ).reshape(4 * C, 4 * Cout)                   # [4C, 4*Cout]
    b_all = jnp.tile(bias[None, :], (1, 4))                        # [1, 4*Cout]

    # ---- layout: flatten (B, H1*W1) rows; x2 in matching 2x2-blocked rows ----
    # TODO(synk): these NCHW->channels-last transposes (and the final un-interleave)
    # are each an HBM round trip; a channels-last model (or a consumer accepting the
    # blocked [R, 4*Cout] output) would eliminate them.
    R = B * H1 * W1
    x1_cl = jnp.transpose(x1, (0, 2, 3, 1)).reshape(R, C)
    x2_blk = (x2.reshape(B, C, H1, 2, W1, 2)
                .transpose(0, 2, 4, 3, 5, 1)                 # [B, h, w, dy, dx, C]
                .reshape(R, 4 * C))                          # col = (dy*2+dx)*C + c

    tm = row_tile if row_tile is not None else _pick_row_tile(R, C, Cout)
    assert tm == R or tm % 8 == 0
    grid = (pl.cdiv(R, tm),)

    flops = 2 * R * (C + 4 * C) * (4 * Cout)
    bytes_accessed = 4 * (R * (C + 4 * C + 4 * Cout)
                          + C * 4 * Cout + 4 * C * 4 * Cout + 4 * Cout)

    o_blk = pl.pallas_call(
        up_kernel,
        out_shape=jax.ShapeDtypeStruct((R, 4 * Cout), jnp.float32),
        grid=grid,
        in_specs=[
            pl.BlockSpec((tm, C), lambda m: (m, 0)),
            pl.BlockSpec((tm, 4 * C), lambda m: (m, 0)),
            pl.BlockSpec((C, 4 * Cout), lambda m: (0, 0)),
            pl.BlockSpec((4 * C, 4 * Cout), lambda m: (0, 0)),
            pl.BlockSpec((1, 4 * Cout), lambda m: (0, 0)),
        ],
        out_specs=pl.BlockSpec((tm, 4 * Cout), lambda m: (m, 0)),
        compiler_params=pltpu.CompilerParams(
            dimension_semantics=("parallel",)),
        cost_estimate=pl.CostEstimate(flops=flops, transcendentals=0,
                                      bytes_accessed=bytes_accessed),
    )(x1_cl, x2_blk, wx1, wblk, b_all)

    # Unblock: [R, 4*Cout] -> [B, Cout, H2, W2].  One wrapper transpose that subsumes
    # both the channels-last -> NCHW conversion and the 2x2 upsample interleave.
    out = (o_blk.reshape(B, H1, W1, 2, 2, Cout)
                .transpose(0, 5, 1, 3, 2, 4)
                .reshape(B, Cout, H2, W2))
    return out


def reference(x1, x2, params):
    """Pure-JAX reference mirroring the PyTorch forward (inference-mode BN)."""
    wt, bt, w2, b2 = params["wt"], params["bt"], params["w2"], params["b2"]
    gamma, beta, mean, var, eps = (params["gamma"], params["beta"],
                                   params["mean"], params["var"], params["eps"])
    B, C, H1, W1 = x1.shape
    up = jnp.einsum('bihw,iopq->bohpwq', x1, wt).reshape(B, C, 2 * H1, 2 * W1)
    up = up + bt[None, :, None, None]
    diffY = x2.shape[2] - up.shape[2]
    diffX = x2.shape[3] - up.shape[3]
    up = jnp.pad(up, ((0, 0), (0, 0),
                      (diffY // 2, diffY - diffY // 2),
                      (diffX // 2, diffX - diffX // 2)))
    cat = jnp.concatenate([x2, up], axis=1)                      # [B, 2C, H2, W2]
    y = jnp.einsum('bchw,oc->bohw', cat, w2) + b2[None, :, None, None]
    s = gamma / jnp.sqrt(var + eps)
    z = (y - mean[None, :, None, None]) * s[None, :, None, None] + beta[None, :, None, None]
    return jnp.maximum(z, 0.0)


if __name__ == "__main__":
    B, C, Cout, H1, W1 = 2, 16, 32, 16, 16
    H2, W2 = 2 * H1, 2 * W1

    key = jax.random.PRNGKey(0)
    ks = jax.random.split(key, 10)

    x1 = jax.random.normal(ks[0], (B, C, H1, W1), jnp.float32)
    x2 = jax.random.normal(ks[1], (B, C, H2, W2), jnp.float32)

    params = dict(
        wt=jax.random.normal(ks[2], (C, C, 2, 2), jnp.float32) / math.sqrt(4 * C),
        bt=jax.random.normal(ks[3], (C,), jnp.float32) * 0.1,
        w2=jax.random.normal(ks[4], (Cout, 2 * C), jnp.float32) / math.sqrt(2 * C),
        b2=jax.random.normal(ks[5], (Cout,), jnp.float32) * 0.1,
        gamma=jax.random.uniform(ks[6], (Cout,), jnp.float32, 0.5, 1.5),
        beta=jax.random.normal(ks[7], (Cout,), jnp.float32) * 0.1,
        mean=jax.random.normal(ks[8], (Cout,), jnp.float32) * 0.1,
        var=jax.random.uniform(ks[9], (Cout,), jnp.float32, 0.5, 1.5),
        eps=1e-5,
    )

    fwd = jax.jit(up_forward)           # auto row tile: 256 -> grid=(2,), both TCs busy
    out = jax.block_until_ready(fwd(x1, x2, params))

    ref = reference(x1, x2, params)
    assert out.shape == (B, Cout, H2, W2), out.shape
    max_err = float(jnp.max(jnp.abs(out - ref)))
    assert jnp.allclose(out, ref, atol=1e-4, rtol=1e-4), max_err

    print("KERNEL_OK")
</pallas_src>

<mosaic_0001>
module attributes {stable_mosaic.version = 11 : i64} {
  func.func @up_kernel(%arg0: i32, %arg1: memref<256x16xf32, #tpu.memory_space<vmem>>, %arg2: memref<256x64xf32, #tpu.memory_space<vmem>>, %arg3: memref<16x128xf32, #tpu.memory_space<vmem>>, %arg4: memref<64x128xf32, #tpu.memory_space<vmem>>, %arg5: memref<1x128xf32, #tpu.memory_space<vmem>>, %arg6: memref<256x128xf32, #tpu.memory_space<vmem>>) attributes {dimension_semantics = [#tpu.dimension_semantics<parallel>], iteration_bounds = array<i64: 2>, scalar_prefetch = 0 : i64, scratch_operands = 0 : i64, tpu.core_type = #tpu.core_type<tc>, window_params = [{transform_indices = @transform_0, window_bounds = array<i64: 256, 16>}, {transform_indices = @transform_1, window_bounds = array<i64: 256, 64>}, {pipeline_mode = #tpu.pipeline_mode<synchronous>, transform_indices = @transform_2, window_bounds = array<i64: 16, 128>}, {pipeline_mode = #tpu.pipeline_mode<synchronous>, transform_indices = @transform_3, window_bounds = array<i64: 64, 128>}, {pipeline_mode = #tpu.pipeline_mode<synchronous>, transform_indices = @transform_4, window_bounds = array<i64: 1, 128>}, {transform_indices = @transform_5, window_bounds = array<i64: 256, 128>}]} {
    %c0 = arith.constant 0 : index
    %c0_0 = arith.constant 0 : index
    %0 = vector.load %arg1[%c0, %c0_0] : memref<256x16xf32, #tpu.memory_space<vmem>>, vector<256x16xf32>
    %c0_1 = arith.constant 0 : index
    %c0_2 = arith.constant 0 : index
    %1 = vector.load %arg3[%c0_1, %c0_2] : memref<16x128xf32, #tpu.memory_space<vmem>>, vector<16x128xf32>
    %cst = arith.constant dense<0.000000e+00> : vector<256x128xf32>
    %2 = tpu.matmul %0, %1, %cst {dimension_numbers = #tpu.dot_dimension_numbers<[1], [0], [0], [1], [0, 0, 1, 1], [], []>} : vector<256x16xf32>, vector<16x128xf32>, vector<256x128xf32> -> vector<256x128xf32>
    %c0_3 = arith.constant 0 : index
    %c0_4 = arith.constant 0 : index
    %3 = vector.load %arg2[%c0_3, %c0_4] : memref<256x64xf32, #tpu.memory_space<vmem>>, vector<256x64xf32>
    %c0_5 = arith.constant 0 : index
    %c0_6 = arith.constant 0 : index
    %4 = vector.load %arg4[%c0_5, %c0_6] : memref<64x128xf32, #tpu.memory_space<vmem>>, vector<64x128xf32>
    %cst_7 = arith.constant dense<0.000000e+00> : vector<256x128xf32>
    %5 = tpu.matmul %3, %4, %cst_7 {dimension_numbers = #tpu.dot_dimension_numbers<[1], [0], [0], [1], [0, 0, 1, 1], [], []>} : vector<256x64xf32>, vector<64x128xf32>, vector<256x128xf32> -> vector<256x128xf32>
    %6 = arith.addf %2, %5 : vector<256x128xf32>
    %c0_8 = arith.constant 0 : index
    %c0_9 = arith.constant 0 : index
    %7 = vector.load %arg5[%c0_8, %c0_9] : memref<1x128xf32, #tpu.memory_space<vmem>>, vector<1x128xf32>
    %8 = vector.broadcast %7 : vector<1x128xf32> to vector<256x128xf32>
    %9 = arith.addf %6, %8 : vector<256x128xf32>
    %cst_10 = arith.constant 0.000000e+00 : f32
    %10 = vector.broadcast %cst_10 : f32 to vector<256x128xf32>
    %11 = arith.maximumf %9, %10 : vector<256x128xf32>
    %c0_11 = arith.constant 0 : index
    %c0_12 = arith.constant 0 : index
    %12 = vector.load %arg6[%c0_11, %c0_12] : memref<256x128xf32, #tpu.memory_space<vmem>>, vector<256x128xf32>
    tpu.vector_store %arg6[%c0_11, %c0_12], %11 {strides = array<i32>} : memref<256x128xf32, #tpu.memory_space<vmem>>, vector<256x128xf32>,
    return
  }
  func.func @transform_0(%arg0: i32) -> (i32, i32) {
    %c0_i32 = arith.constant 0 : i32
    %c0_i32_0 = arith.constant 0 : i32
    return %arg0, %c0_i32 : i32, i32
  }
  func.func @transform_1(%arg0: i32) -> (i32, i32) {
    %c0_i32 = arith.constant 0 : i32
    %c0_i32_0 = arith.constant 0 : i32
    return %arg0, %c0_i32 : i32, i32
  }
  func.func @transform_2(%arg0: i32) -> (i32, i32) {
    %c0_i32 = arith.constant 0 : i32
    %c0_i32_0 = arith.constant 0 : i32
    %c0_i32_1 = arith.constant 0 : i32
    return %c0_i32, %c0_i32_0 : i32, i32
  }
  func.func @transform_3(%arg0: i32) -> (i32, i32) {
    %c0_i32 = arith.constant 0 : i32
    %c0_i32_0 = arith.constant 0 : i32
    %c0_i32_1 = arith.constant 0 : i32
    return %c0_i32, %c0_i32_0 : i32, i32
  }
  func.func @transform_4(%arg0: i32) -> (i32, i32) {
    %c0_i32 = arith.constant 0 : i32
    %c0_i32_0 = arith.constant 0 : i32
    %c0_i32_1 = arith.constant 0 : i32
    return %c0_i32, %c0_i32_0 : i32, i32
  }
  func.func @transform_5(%arg0: i32) -> (i32, i32) {
    %c0_i32 = arith.constant 0 : i32
    %c0_i32_0 = arith.constant 0 : i32
    return %arg0, %c0_i32 : i32, i32
  }
}

</mosaic_0001>

<bundles_post_ra>
// kernel: up_forward.1
= control target key start
LH: loop header
LB: loop body
LE: loop exit
PB: predicated region body
PF: predicated region fallthrough
CT: control target
= control target key end

     0   :  { %s1453_s18 = smov 0   ;;  %s1711_s0 = inlined_call_operand.vmem [shape: f32[512,16], index: 0, kind: input, shape index: {}]   ;;  %s1712_s1 = inlined_call_operand.vmem [shape: f32[512,64], index: 1, kind: input, shape index: {}]   ;;  %s1713_s2 = inlined_call_operand.vmem [shape: f32[16,128], index: 2, kind: input, shape index: {}]   ;;  %s1714_s3 = inlined_call_operand.vmem [shape: f32[64,128], index: 3, kind: input, shape index: {}]   ;;  %s1715_s4 = inlined_call_operand.vmem [shape: f32[1,128], index: 4, kind: input, shape index: {}]   ;;  %s1716_s5 = inlined_call_operand.vmem [shape: f32[512,128], index: 5, kind: output, shape index: {}]  }
   0x1 LB: > { %s1139_s19 = sadd.s32 4294967295, %s1421_s18   ;;  %p1143_p0 = scmp.ge.s32.totalorder %s1421_s18, 1  ;;  %s1421_s18 = sphi %s1453_s18, %s15_s18  }
   0x2   : > { %p199_p1 = scmp.lt.s32.totalorder %s1421_s18, 3 }
   0x4   : > { %p200_p2 = pnand %p1143_p0, %p199_p1 }
   0x5   : > { %s1144_s24 = sshll.u32 (!%p200_p2), %s1139_s19, 5 }
   0x6   : > { %203 = sbr.rel (%p200_p2) target bundleno = 290 (0x122), region = 40  ;;  %p233_p3 = scmp.lt.s32.totalorder (!%p200_p2), %s1144_s24, 63 }
   0xb   : > { %v323_v0 = vld [vmem:[%s1714_s3 + $0x38] sm:$0xff]  ;;  %v322_v1 = vld [vmem:[%s1714_s3 + $0x30] sm:$0xff]  ;;  %v321_v2 = vld [vmem:[%s1714_s3 + $0x28] sm:$0xff]  ;;  %s1718_s24 = smov (!%p233_p3, %s1144_s24), 63  ;;  %vm646_vm0 = vcmask 130048   ;;  %vm324_vm1 = vcmask 523264  }
   0xc   : > { %1291 = vmatprep.subr.mxu0 %v323_v0  ;;  %v283_v3 = vld [vmem:[%s1713_s2 + $0x8] sm:$0xff]  ;;  %v282_v4 = vld [vmem:[%s1713_s2] sm:$0xff]  ;;  %s1479_s8 = sshll.u32 %s1718_s24, 3  ;;  %v319_v6 = vld [vmem:[%s1714_s3 + $0x18] sm:$0xff] }
   0xd   : > { %1292 = vmatpush3.msra.mxu0 %v323_v0  ;;  %1355 = vmatprep.subr.mxu1 %v283_v3  ;;  %v320_v5 = vld [vmem:[%s1714_s3 + $0x20] sm:$0xff]  ;;  %s1488_s13 = scalar_lea.vmem %s1711_s0, %s1479_s8  ;;  %s1494_s16 = scalar_lea.vmem %s1712_s1, %s1479_s8  ;;  %v318_v10 = vld [vmem:[%s1714_s3 + $0x10] sm:$0xff]  ;;  %v317_v12 = vld [vmem:[%s1714_s3 + $0x8] sm:$0xff] }
   0xe   : > { %1293 = vmatprep.subr.mxu0 %v322_v1  ;;  %1356 = vmatpush3.msra.mxu1 %v283_v3  ;;  %v250_v7 = vld [vmem:[%s1488_s13] sm:$0xff]  ;;  %v251_v8 = vld [vmem:[%s1488_s13 + $0x8] sm:$0xff]  ;;  %v252_v11 = vld [vmem:[%s1488_s13 + $0x10] sm:$0xff]  ;;  %s1643_s28 = scalar_lea.vmem %s1716_s5, %s1479_s8 }
   0xf   : > { %1294 = vmatpush3.msra.mxu0 %v322_v1  ;;  %1357 = vmatprep.subr.mxu1 %v282_v4  ;;  %v284_v9 = vld [vmem:[%s1494_s16] sm:$0xff]  ;;  %v253_v13 = vld [vmem:[%s1488_s13 + $0x18] sm:$0xff]  ;;  %v285_v16 = vld [vmem:[%s1494_s16 + $0x8] sm:$0xff] }
  0x10   : > { %1295 = vmatprep.subr.mxu0 %v321_v2  ;;  %1358 = vmatpush3.msra.mxu1 %v282_v4  ;;  %v254_v14 = vld [vmem:[%s1488_s13 + $0x20] sm:$0xff]  ;;  %v255_v17 = vld [vmem:[%s1488_s13 + $0x28] sm:$0xff]  ;;  %v286_v18 = vld [vmem:[%s1494_s16 + $0x10] sm:$0xff] }
  0x11   : > { %1296 = vmatpush3.msra.mxu0 %v321_v2  ;;  %1359 = vmatprep.mubr.msk.f32.mxu1 %vm646_vm0, %v250_v7  ;;  %v316_v15 = vld [vmem:[%s1714_s3] sm:$0xff]  ;;  %v256_v19 = vld [vmem:[%s1488_s13 + $0x30] sm:$0xff]  ;;  %v287_v20 = vld [vmem:[%s1494_s16 + $0x18] sm:$0xff] }
  0x12   : > { %1297 = vmatprep.subr.mxu0 %v320_v5  ;;  %1360 = vmatmul.mubr.msk.f32.vlgmr.msra.gmra.mxu1 %vm646_vm0, %v251_v8  ;;  %v257_v21 = vld [vmem:[%s1488_s13 + $0x38] sm:$0xff]  ;;  %v288_v22 = vld [vmem:[%s1494_s16 + $0x20] sm:$0xff]  ;;  %v289_v24 = vld [vmem:[%s1494_s16 + $0x28] sm:$0xff] }
  0x13   : > { %1298 = vmatpush3.msra.mxu0 %v320_v5  ;;  %1307 = vmatprep.mubr.msk.f32.mxu0 %vm324_vm1, %v284_v9  ;;  %v258_v23 = vld [vmem:[%s1488_s13 + $0x40] sm:$0xff]  ;;  %v259_v25 = vld [vmem:[%s1488_s13 + $0x48] sm:$0xff]  ;;  %v290_v26 = vld [vmem:[%s1494_s16 + $0x30] sm:$0xff] }
  0x14   : > { %1299 = vmatprep.subr.mxu0 %v319_v6  ;;  %1362 = vmatprep.mubr.msk.f32.mxu1 %vm646_vm0, %v252_v11  ;;  %v260_v27 = vld [vmem:[%s1488_s13 + $0x50] sm:$0xff]  ;;  %v291_v28 = vld [vmem:[%s1494_s16 + $0x38] sm:$0xff]  ;;  %v292_v30 = vld [vmem:[%s1494_s16 + $0x40] sm:$0xff] }
  0x15   : > { %1300 = vmatpush3.msra.mxu0 %v319_v6  ;;  %v261_v29 = vld [vmem:[%s1488_s13 + $0x58] sm:$0xff]  ;;  %v262_v31 = vld [vmem:[%s1488_s13 + $0x60] sm:$0xff]  ;;  %v293_v32 = vld [vmem:[%s1494_s16 + $0x48] sm:$0xff] }
  0x16   : > { %1301 = vmatprep.subr.mxu0 %v318_v10  ;;  %1363 = vmatmul.mubr.msk.f32.gmra.mxu1 %vm646_vm0, %v253_v13  ;;  %v263_v33 = vld [vmem:[%s1488_s13 + $0x68] sm:$0xff]  ;;  %v294_v34 = vld [vmem:[%s1494_s16 + $0x50] sm:$0xff]  ;;  %v295_v36 = vld [vmem:[%s1494_s16 + $0x58] sm:$0xff] }
  0x17   : > { %1302 = vmatpush3.msra.mxu0 %v318_v10  ;;  %1365 = vmatprep.mubr.msk.f32.mxu1 %vm646_vm0, %v254_v14  ;;  %v264_v35 = vld [vmem:[%s1488_s13 + $0x70] sm:$0xff]  ;;  %v265_v37 = vld [vmem:[%s1488_s13 + $0x78] sm:$0xff]  ;;  %v296_v38 = vld [vmem:[%s1494_s16 + $0x60] sm:$0xff] }
  0x18   : > { %1303 = vmatprep.subr.mxu0 %v317_v12  ;;  %v266_v39 = vld [vmem:[%s1488_s13 + $0x80] sm:$0xff]  ;;  %v297_v40 = vld [vmem:[%s1494_s16 + $0x68] sm:$0xff]  ;;  %v298_v42 = vld [vmem:[%s1494_s16 + $0x70] sm:$0xff] }
  0x19   : > { %1304 = vmatpush3.msra.mxu0 %v317_v12  ;;  %v267_v41 = vld [vmem:[%s1488_s13 + $0x88] sm:$0xff]  ;;  %v268_v43 = vld [vmem:[%s1488_s13 + $0x90] sm:$0xff]  ;;  %v299_v44 = vld [vmem:[%s1494_s16 + $0x78] sm:$0xff] }
  0x1a   : > { %1305 = vmatprep.subr.mxu0 %v316_v15  ;;  %1366 = vmatmul.mubr.msk.f32.gmra.mxu1 %vm646_vm0, %v255_v17  ;;  %v269_v45 = vld [vmem:[%s1488_s13 + $0x98] sm:$0xff]  ;;  %v300_v46 = vld [vmem:[%s1494_s16 + $0x80] sm:$0xff]  ;;  %v301_v48 = vld [vmem:[%s1494_s16 + $0x88] sm:$0xff] }
  0x1b   : > { %1306 = vmatpush3.msra.mxu0 %v316_v15  ;;  %1368 = vmatprep.mubr.msk.f32.mxu1 %vm646_vm0, %v256_v19  ;;  %v270_v47 = vld [vmem:[%s1488_s13 + $0xa0] sm:$0xff]  ;;  %v271_v49 = vld [vmem:[%s1488_s13 + $0xa8] sm:$0xff]  ;;  %v302_v50 = vld [vmem:[%s1494_s16 + $0x90] sm:$0xff] }
  0x1c   : > { %1308 = vmatmul.mubr.msk.f32.vlgmr.msra.gmra.mxu0 %vm324_vm1, %v285_v16  ;;  %v272_v51 = vld [vmem:[%s1488_s13 + $0xb0] sm:$0xff]  ;;  %v303_v52 = vld [vmem:[%s1494_s16 + $0x98] sm:$0xff]  ;;  %v304_v54 = vld [vmem:[%s1494_s16 + $0xa0] sm:$0xff] }
  0x1d   : > { %1310 = vmatprep.mubr.msk.f32.mxu0 %vm324_vm1, %v286_v18  ;;  %v273_v53 = vld [vmem:[%s1488_s13 + $0xb8] sm:$0xff]  ;;  %v274_v55 = vld [vmem:[%s1488_s13 + $0xc0] sm:$0xff]  ;;  %v305_v56 = vld [vmem:[%s1494_s16 + $0xa8] sm:$0xff] }
  0x1e   : > { %1369 = vmatmul.mubr.msk.f32.gmra.mxu1 %vm646_vm0, %v257_v21  ;;  %v275_v57 = vld [vmem:[%s1488_s13 + $0xc8] sm:$0xff]  ;;  %v306_v58 = vld [vmem:[%s1494_s16 + $0xb0] sm:$0xff]  ;;  %v307_v60 = vld [vmem:[%s1494_s16 + $0xb8] sm:$0xff] }
  0x1f   : > { %1371 = vmatprep.mubr.msk.f32.mxu1 %vm646_vm0, %v258_v23  ;;  %v276_v59 = vld [vmem:[%s1488_s13 + $0xd0] sm:$0xff]  ;;  %v277_v61 = vld [vmem:[%s1488_s13 + $0xd8] sm:$0xff]  ;;  %v308_v62 = vld [vmem:[%s1494_s16 + $0xc0] sm:$0xff] }
  0x20   : > { %1311 = vmatmul.mubr.msk.f32.gmra.mxu0 %vm324_vm1, %v287_v20  ;;  %v278_v63 = vld [vmem:[%s1488_s13 + $0xe0] sm:$0xff]  ;;  %v309_v0 = vld [vmem:[%s1494_s16 + $0xc8] sm:$0xff]  ;;  %v310_v2 = vld [vmem:[%s1494_s16 + $0xd0] sm:$0xff] }
  0x21   : > { %1313 = vmatprep.mubr.msk.f32.mxu0 %vm324_vm1, %v288_v22  ;;  %v279_v1 = vld [vmem:[%s1488_s13 + $0xe8] sm:$0xff]  ;;  %v280_v3 = vld [vmem:[%s1488_s13 + $0xf0] sm:$0xff]  ;;  %v311_v4 = vld [vmem:[%s1494_s16 + $0xd8] sm:$0xff] }
  0x22   : > { %1372 = vmatmul.mubr.msk.f32.gmra.mxu1 %vm646_vm0, %v259_v25  ;;  %v281_v5 = vld [vmem:[%s1488_s13 + $0xf8] sm:$0xff]  ;;  %v312_v6 = vld [vmem:[%s1494_s16 + $0xe0] sm:$0xff]  ;;  %v313_v7 = vld [vmem:[%s1494_s16 + $0xe8] sm:$0xff] }
  0x23   : > { %1374 = vmatprep.mubr.msk.f32.mxu1 %vm646_vm0, %v260_v27  ;;  %v314_v8 = vld [vmem:[%s1494_s16 + $0xf0] sm:$0xff]  ;;  %v315_v9 = vld [vmem:[%s1494_s16 + $0xf8] sm:$0xff]  ;;  %v1636_v15 = vld [vmem:[%s1715_s4] ss:$0 sm:$0xff] }
  0x24   : > { %1314 = vmatmul.mubr.msk.f32.gmra.mxu0 %vm324_vm1, %v289_v24 }
  0x25   : > { %1316 = vmatprep.mubr.msk.f32.mxu0 %vm324_vm1, %v290_v26 }
  0x26   : > { %1375 = vmatmul.mubr.msk.f32.gmra.mxu1 %vm646_vm0, %v261_v29 }
  0x27   : > { %1377 = vmatprep.mubr.msk.f32.mxu1 %vm646_vm0, %v262_v31 }
  0x28   : > { %1317 = vmatmul.mubr.msk.f32.gmra.mxu0 %vm324_vm1, %v291_v28 }
  0x29   : > { %1319 = vmatprep.mubr.msk.f32.mxu0 %vm324_vm1, %v292_v30 }
  0x2a   : > { %1378 = vmatmul.mubr.msk.f32.gmra.mxu1 %vm646_vm0, %v263_v33 }
  0x2b   : > { %1380 = vmatprep.mubr.msk.f32.mxu1 %vm646_vm0, %v264_v35 }
  0x2c   : > { %1320 = vmatmul.mubr.msk.f32.gmra.mxu0 %vm324_vm1, %v293_v32 }
  0x2d   : > { %1322 = vmatprep.mubr.msk.f32.mxu0 %vm324_vm1, %v294_v34 }
  0x2e   : > { %1381 = vmatmul.mubr.msk.f32.gmra.mxu1 %vm646_vm0, %v265_v37 }
  0x2f   : > { %1383 = vmatprep.mubr.msk.f32.mxu1 %vm646_vm0, %v266_v39 }
  0x30   : > { %1323 = vmatmul.mubr.msk.f32.gmra.mxu0 %vm324_vm1, %v295_v36 }
  0x31   : > { %1325 = vmatprep.mubr.msk.f32.mxu0 %vm324_vm1, %v296_v38 }
  0x32   : > { %1384 = vmatmul.mubr.msk.f32.gmra.mxu1 %vm646_vm0, %v267_v41 }
  0x33   : > { %1386 = vmatprep.mubr.msk.f32.mxu1 %vm646_vm0, %v268_v43 }
  0x34   : > { %1326 = vmatmul.mubr.msk.f32.gmra.mxu0 %vm324_vm1, %v297_v40 }
  0x35   : > { %1328 = vmatprep.mubr.msk.f32.mxu0 %vm324_vm1, %v298_v42 }
  0x36   : > { %1387 = vmatmul.mubr.msk.f32.gmra.mxu1 %vm646_vm0, %v269_v45 }
  0x37   : > { %1389 = vmatprep.mubr.msk.f32.mxu1 %vm646_vm0, %v270_v47 }
  0x38   : > { %1329 = vmatmul.mubr.msk.f32.gmra.mxu0 %vm324_vm1, %v299_v44 }
  0x39   : > { %1331 = vmatprep.mubr.msk.f32.mxu0 %vm324_vm1, %v300_v46 }
  0x3a   : > { %1390 = vmatmul.mubr.msk.f32.gmra.mxu1 %vm646_vm0, %v271_v49 }
  0x3b   : > { %1392 = vmatprep.mubr.msk.f32.mxu1 %vm646_vm0, %v272_v51 }
  0x3c   : > { %1332 = vmatmul.mubr.msk.f32.gmra.mxu0 %vm324_vm1, %v301_v48 }
  0x3d   : > { %1334 = vmatprep.mubr.msk.f32.mxu0 %vm324_vm1, %v302_v50 }
  0x3e   : > { %1393 = vmatmul.mubr.msk.f32.gmra.mxu1 %vm646_vm0, %v273_v53 }
  0x3f   : > { %1395 = vmatprep.mubr.msk.f32.mxu1 %vm646_vm0, %v274_v55 }
  0x40   : > { %1335 = vmatmul.mubr.msk.f32.gmra.mxu0 %vm324_vm1, %v303_v52 }
  0x41   : > { %1337 = vmatprep.mubr.msk.f32.mxu0 %vm324_vm1, %v304_v54 }
  0x42   : > { %1396 = vmatmul.mubr.msk.f32.gmra.mxu1 %vm646_vm0, %v275_v57 }
  0x43   : > { %1398 = vmatprep.mubr.msk.f32.mxu1 %vm646_vm0, %v276_v59 }
  0x44   : > { %1338 = vmatmul.mubr.msk.f32.gmra.mxu0 %vm324_vm1, %v305_v56 }
  0x45   : > { %1340 = vmatprep.mubr.msk.f32.mxu0 %vm324_vm1, %v306_v58 }
  0x46   : > { %1399 = vmatmul.mubr.msk.f32.gmra.mxu1 %vm646_vm0, %v277_v61 }
  0x47   : > { %1401 = vmatprep.mubr.msk.f32.mxu1 %vm646_vm0, %v278_v63 }
  0x48   : > { %1341 = vmatmul.mubr.msk.f32.gmra.mxu0 %vm324_vm1, %v307_v60 }
  0x49   : > { %1343 = vmatprep.mubr.msk.f32.mxu0 %vm324_vm1, %v308_v62 }
  0x4a   : > { %1402 = vmatmul.mubr.msk.f32.gmra.mxu1 %vm646_vm0, %v279_v1 }
  0x4b   : > { %1404 = vmatprep.mubr.msk.f32.mxu1 %vm646_vm0, %v280_v3 }
  0x4c   : > { %1344 = vmatmul.mubr.msk.f32.gmra.mxu0 %vm324_vm1, %v309_v0 }
  0x4d   : > { %1346 = vmatprep.mubr.msk.f32.mxu0 %vm324_vm1, %v310_v2 }
  0x4e   : > { %1405 = vmatmul.mubr.msk.f32.gmra.mxu1 %vm646_vm0, %v281_v5 }
  0x50   : > { %1347 = vmatmul.mubr.msk.f32.gmra.mxu0 %vm324_vm1, %v311_v4 }
  0x51   : > { %1349 = vmatprep.mubr.msk.f32.mxu0 %vm324_vm1, %v312_v6 }
  0x54   : > { %1350 = vmatmul.mubr.msk.f32.gmra.mxu0 %vm324_vm1, %v313_v7 }
  0x55   : > { %1352 = vmatprep.mubr.msk.f32.mxu0 %vm324_vm1, %v314_v8 }
  0x58   : > { %1353 = vmatmul.mubr.msk.f32.gmra.mxu0 %vm324_vm1, %v315_v9 }
  0xd2   : > { %v1361_v10 = vpop.f32.mrf.mxu1 }
  0xd4   : > { %v809_v11 = vpop.f32.mrf.mxu1 }
  0xd6   : > { %v1364_v12 = vpop.f32.mrf.mxu1 }
  0xd8   : > { %v819_v13 = vpop.f32.mrf.mxu1 }
  0xda   : > { %v1367_v16 = vpop.f32.mrf.mxu1 }
  0xdc   : > { %v1309_v14 = vpop.f32.mrf.mxu0  ;;  %v829_v19 = vpop.f32.mrf.mxu1 }
  0xdd   : > { %v815_v17 = vadd.f32 %v1361_v10, %v1309_v14 }
  0xde   : > { %v487_v18 = vpop.f32.mrf.mxu0  ;;  %v1370_v23 = vpop.f32.mrf.mxu1 }
  0xdf   : > { %v976_v20 = vadd.f32 %v1636_v15, %v815_v17  ;;  %v810_v21 = vadd.f32 %v809_v11, %v487_v18 }
  0xe0   : > { %v1312_v22 = vpop.f32.mrf.mxu0  ;;  %v839_v28 = vpop.f32.mrf.mxu1 }
  0xe1   : > { %v1008_v24 = vmax.f32 %v976_v20, 0.0  ;;  %v975_v25 = vadd.f32 %v1636_v15, %v810_v21  ;;  %v825_v26 = vadd.f32 %v1364_v12, %v1312_v22 }
  0xe2   : > { %v497_v27 = vpop.f32.mrf.mxu0  ;;  %v1373_v33 = vpop.f32.mrf.mxu1 }
  0xe3   : > { %1040 = vst [vmem:[%s1643_s28 + $0x8] sm:$0xff] %v1008_v24  ;;  %v1007_v29 = vmax.f32 %v975_v25, 0.0  ;;  %v978_v30 = vadd.f32 %v1636_v15, %v825_v26  ;;  %v820_v31 = vadd.f32 %v819_v13, %v497_v27 }
  0xe4   : > { %v1315_v32 = vpop.f32.mrf.mxu0  ;;  %v849_v38 = vpop.f32.mrf.mxu1 }
  0xe5   : > { %1039 = vst [vmem:[%s1643_s28] sm:$0xff] %v1007_v29  ;;  %v1010_v34 = vmax.f32 %v978_v30, 0.0  ;;  %v977_v35 = vadd.f32 %v1636_v15, %v820_v31  ;;  %v835_v36 = vadd.f32 %v1367_v16, %v1315_v32 }
  0xe6   : > { %v507_v37 = vpop.f32.mrf.mxu0  ;;  %v1376_v43 = vpop.f32.mrf.mxu1 }
  0xe7   : > { %1042 = vst [vmem:[%s1643_s28 + $0x18] sm:$0xff] %v1010_v34  ;;  %v1009_v39 = vmax.f32 %v977_v35, 0.0  ;;  %v980_v40 = vadd.f32 %v1636_v15, %v835_v36  ;;  %v830_v41 = vadd.f32 %v829_v19, %v507_v37 }
  0xe8   : > { %v1318_v42 = vpop.f32.mrf.mxu0  ;;  %v859_v48 = vpop.f32.mrf.mxu1 }
  0xe9   : > { %1041 = vst [vmem:[%s1643_s28 + $0x10] sm:$0xff] %v1009_v39  ;;  %v1012_v44 = vmax.f32 %v980_v40, 0.0  ;;  %v979_v45 = vadd.f32 %v1636_v15, %v830_v41  ;;  %v845_v46 = vadd.f32 %v1370_v23, %v1318_v42 }
  0xea   : > { %v517_v47 = vpop.f32.mrf.mxu0  ;;  %v1379_v53 = vpop.f32.mrf.mxu1 }
  0xeb   : > { %1044 = vst [vmem:[%s1643_s28 + $0x28] sm:$0xff] %v1012_v44  ;;  %v1011_v49 = vmax.f32 %v979_v45, 0.0  ;;  %v982_v50 = vadd.f32 %v1636_v15, %v845_v46  ;;  %v840_v51 = vadd.f32 %v839_v28, %v517_v47 }
  0xec   : > { %v1321_v52 = vpop.f32.mrf.mxu0  ;;  %v869_v58 = vpop.f32.mrf.mxu1 }
  0xed   : > { %1043 = vst [vmem:[%s1643_s28 + $0x20] sm:$0xff] %v1011_v49  ;;  %v1014_v54 = vmax.f32 %v982_v50, 0.0  ;;  %v981_v55 = vadd.f32 %v1636_v15, %v840_v51  ;;  %v855_v56 = vadd.f32 %v1373_v33, %v1321_v52 }
  0xee   : > { %v527_v57 = vpop.f32.mrf.mxu0  ;;  %v1382_v63 = vpop.f32.mrf.mxu1 }
  0xef   : > { %1046 = vst [vmem:[%s1643_s28 + $0x38] sm:$0xff] %v1014_v54  ;;  %v1013_v59 = vmax.f32 %v981_v55, 0.0  ;;  %v984_v60 = vadd.f32 %v1636_v15, %v855_v56  ;;  %v850_v61 = vadd.f32 %v849_v38, %v527_v57 }
  0xf0   : > { %v1324_v62 = vpop.f32.mrf.mxu0  ;;  %v879_v4 = vpop.f32.mrf.mxu1 }
  0xf1   : > { %1045 = vst [vmem:[%s1643_s28 + $0x30] sm:$0xff] %v1013_v59  ;;  %v1016_v0 = vmax.f32 %v984_v60, 0.0  ;;  %v983_v1 = vadd.f32 %v1636_v15, %v850_v61  ;;  %v865_v2 = vadd.f32 %v1376_v43, %v1324_v62 }
  0xf2   : > { %v537_v3 = vpop.f32.mrf.mxu0  ;;  %v1385_v9 = vpop.f32.mrf.mxu1 }
  0xf3   : > { %1048 = vst [vmem:[%s1643_s28 + $0x48] sm:$0xff] %v1016_v0  ;;  %v1015_v5 = vmax.f32 %v983_v1, 0.0  ;;  %v986_v6 = vadd.f32 %v1636_v15, %v865_v2  ;;  %v860_v7 = vadd.f32 %v859_v48, %v537_v3 }
  0xf4   : > { %v1327_v8 = vpop.f32.mrf.mxu0  ;;  %v889_v14 = vpop.f32.mrf.mxu1 }
  0xf5   : > { %1047 = vst [vmem:[%s1643_s28 + $0x40] sm:$0xff] %v1015_v5  ;;  %v1018_v10 = vmax.f32 %v986_v6, 0.0  ;;  %v985_v11 = vadd.f32 %v1636_v15, %v860_v7  ;;  %v875_v12 = vadd.f32 %v1379_v53, %v1327_v8 }
  0xf6   : > { %v547_v13 = vpop.f32.mrf.mxu0  ;;  %v1388_v20 = vpop.f32.mrf.mxu1 }
  0xf7   : > { %1050 = vst [vmem:[%s1643_s28 + $0x58] sm:$0xff] %v1018_v10  ;;  %v1017_v16 = vmax.f32 %v985_v11, 0.0  ;;  %v988_v17 = vadd.f32 %v1636_v15, %v875_v12  ;;  %v870_v18 = vadd.f32 %v869_v58, %v547_v13 }
  0xf8   : > { %v1330_v19 = vpop.f32.mrf.mxu0  ;;  %v899_v25 = vpop.f32.mrf.mxu1 }
  0xf9   : > { %1049 = vst [vmem:[%s1643_s28 + $0x50] sm:$0xff] %v1017_v16  ;;  %v1020_v21 = vmax.f32 %v988_v17, 0.0  ;;  %v987_v22 = vadd.f32 %v1636_v15, %v870_v18  ;;  %v885_v23 = vadd.f32 %v1382_v63, %v1330_v19 }
  0xfa   : > { %v557_v24 = vpop.f32.mrf.mxu0  ;;  %v1391_v30 = vpop.f32.mrf.mxu1 }
  0xfb   : > { %1052 = vst [vmem:[%s1643_s28 + $0x68] sm:$0xff] %v1020_v21  ;;  %v1019_v26 = vmax.f32 %v987_v22, 0.0  ;;  %v990_v27 = vadd.f32 %v1636_v15, %v885_v23  ;;  %v880_v28 = vadd.f32 %v879_v4, %v557_v24 }
  0xfc   : > { %v1333_v29 = vpop.f32.mrf.mxu0  ;;  %v909_v35 = vpop.f32.mrf.mxu1 }
  0xfd   : > { %1051 = vst [vmem:[%s1643_s28 + $0x60] sm:$0xff] %v1019_v26  ;;  %v1022_v31 = vmax.f32 %v990_v27, 0.0  ;;  %v989_v32 = vadd.f32 %v1636_v15, %v880_v28  ;;  %v895_v33 = vadd.f32 %v1385_v9, %v1333_v29 }
  0xfe   : > { %v567_v34 = vpop.f32.mrf.mxu0  ;;  %v1394_v40 = vpop.f32.mrf.mxu1 }
  0xff   : > { %1054 = vst [vmem:[%s1643_s28 + $0x78] sm:$0xff] %v1022_v31  ;;  %v1021_v36 = vmax.f32 %v989_v32, 0.0  ;;  %v992_v37 = vadd.f32 %v1636_v15, %v895_v33  ;;  %v890_v38 = vadd.f32 %v889_v14, %v567_v34 }
 0x100   : > { %v1336_v39 = vpop.f32.mrf.mxu0  ;;  %v919_v45 = vpop.f32.mrf.mxu1 }
 0x101   : > { %1053 = vst [vmem:[%s1643_s28 + $0x70] sm:$0xff] %v1021_v36  ;;  %v1024_v41 = vmax.f32 %v992_v37, 0.0  ;;  %v991_v42 = vadd.f32 %v1636_v15, %v890_v38  ;;  %v905_v43 = vadd.f32 %v1388_v20, %v1336_v39 }
 0x102   : > { %v577_v44 = vpop.f32.mrf.mxu0  ;;  %v1397_v50 = vpop.f32.mrf.mxu1 }
 0x103   : > { %1056 = vst [vmem:[%s1643_s28 + $0x88] sm:$0xff] %v1024_v41  ;;  %v1023_v46 = vmax.f32 %v991_v42, 0.0  ;;  %v994_v47 = vadd.f32 %v1636_v15, %v905_v43  ;;  %v900_v48 = vadd.f32 %v899_v25, %v577_v44 }
 0x104   : > { %v1339_v49 = vpop.f32.mrf.mxu0  ;;  %v929_v55 = vpop.f32.mrf.mxu1 }
 0x105   : > { %1055 = vst [vmem:[%s1643_s28 + $0x80] sm:$0xff] %v1023_v46  ;;  %v1026_v51 = vmax.f32 %v994_v47, 0.0  ;;  %v993_v52 = vadd.f32 %v1636_v15, %v900_v48  ;;  %v915_v53 = vadd.f32 %v1391_v30, %v1339_v49 }
 0x106   : > { %v587_v54 = vpop.f32.mrf.mxu0  ;;  %v1400_v60 = vpop.f32.mrf.mxu1 }
 0x107   : > { %1058 = vst [vmem:[%s1643_s28 + $0x98] sm:$0xff] %v1026_v51  ;;  %v1025_v56 = vmax.f32 %v993_v52, 0.0  ;;  %v996_v57 = vadd.f32 %v1636_v15, %v915_v53  ;;  %v910_v58 = vadd.f32 %v909_v35, %v587_v54 }
 0x108   : > { %v1342_v59 = vpop.f32.mrf.mxu0  ;;  %v939_v1 = vpop.f32.mrf.mxu1 }
 0x109   : > { %1057 = vst [vmem:[%s1643_s28 + $0x90] sm:$0xff] %v1025_v56  ;;  %v1028_v61 = vmax.f32 %v996_v57, 0.0  ;;  %v995_v62 = vadd.f32 %v1636_v15, %v910_v58  ;;  %v925_v63 = vadd.f32 %v1394_v40, %v1342_v59 }
 0x10a   : > { %v597_v0 = vpop.f32.mrf.mxu0  ;;  %v1403_v10 = vpop.f32.mrf.mxu1 }
 0x10b   : > { %1060 = vst [vmem:[%s1643_s28 + $0xa8] sm:$0xff] %v1028_v61  ;;  %v1027_v2 = vmax.f32 %v995_v62, 0.0  ;;  %v998_v3 = vadd.f32 %v1636_v15, %v925_v63  ;;  %v920_v4 = vadd.f32 %v919_v45, %v597_v0 }
 0x10c   : > { %v1345_v5 = vpop.f32.mrf.mxu0  ;;  %v949_v20 = vpop.f32.mrf.mxu1 }
 0x10d   : > { %1059 = vst [vmem:[%s1643_s28 + $0xa0] sm:$0xff] %v1027_v2  ;;  %v1030_v6 = vmax.f32 %v998_v3, 0.0  ;;  %v997_v7 = vadd.f32 %v1636_v15, %v920_v4  ;;  %v935_v8 = vadd.f32 %v1397_v50, %v1345_v5 }
 0x10e   : > { %v607_v9 = vpop.f32.mrf.mxu0  ;;  %v1406_v29 = vpop.f32.mrf.mxu1 }
 0x10f   : > { %1062 = vst [vmem:[%s1643_s28 + $0xb8] sm:$0xff] %v1030_v6  ;;  %v1029_v11 = vmax.f32 %v997_v7, 0.0  ;;  %v1000_v12 = vadd.f32 %v1636_v15, %v935_v8  ;;  %v930_v13 = vadd.f32 %v929_v55, %v607_v9 }
 0x110   : > { %v1348_v14 = vpop.f32.mrf.mxu0  ;;  %v959_v37 = vpop.f32.mrf.mxu1 }
 0x111   : > { %1061 = vst [vmem:[%s1643_s28 + $0xb0] sm:$0xff] %v1029_v11  ;;  %v1032_v16 = vmax.f32 %v1000_v12, 0.0  ;;  %v999_v17 = vadd.f32 %v1636_v15, %v930_v13  ;;  %v945_v18 = vadd.f32 %v1400_v60, %v1348_v14 }
 0x112   : > { %v617_v19 = vpop.f32.mrf.mxu0 }
 0x113   : > { %1064 = vst [vmem:[%s1643_s28 + $0xc8] sm:$0xff] %v1032_v16  ;;  %v1031_v21 = vmax.f32 %v999_v17, 0.0  ;;  %v1002_v22 = vadd.f32 %v1636_v15, %v945_v18  ;;  %v940_v23 = vadd.f32 %v939_v1, %v617_v19 }
 0x114   : > { %v1351_v24 = vpop.f32.mrf.mxu0 }
 0x115   : > { %1063 = vst [vmem:[%s1643_s28 + $0xc0] sm:$0xff] %v1031_v21  ;;  %v1034_v25 = vmax.f32 %v1002_v22, 0.0  ;;  %v1001_v26 = vadd.f32 %v1636_v15, %v940_v23  ;;  %v955_v27 = vadd.f32 %v1403_v10, %v1351_v24 }
 0x116   : > { %v627_v28 = vpop.f32.mrf.mxu0 }
 0x117   : > { %1066 = vst [vmem:[%s1643_s28 + $0xd8] sm:$0xff] %v1034_v25  ;;  %v1033_v30 = vmax.f32 %v1001_v26, 0.0  ;;  %v1004_v31 = vadd.f32 %v1636_v15, %v955_v27  ;;  %v950_v32 = vadd.f32 %v949_v20, %v627_v28 }
 0x118   : > { %v1354_v33 = vpop.f32.mrf.mxu0 }
 0x119   : > { %1065 = vst [vmem:[%s1643_s28 + $0xd0] sm:$0xff] %v1033_v30  ;;  %v1036_v34 = vmax.f32 %v1004_v31, 0.0  ;;  %v1003_v35 = vadd.f32 %v1636_v15, %v950_v32  ;;  %v965_v36 = vadd.f32 %v1406_v29, %v1354_v33 }
 0x11a   : > { %v637_v38 = vpop.f32.mrf.mxu0 }
 0x11b   : > { %1068 = vst [vmem:[%s1643_s28 + $0xe8] sm:$0xff] %v1036_v34  ;;  %v1035_v39 = vmax.f32 %v1003_v35, 0.0  ;;  %v1006_v40 = vadd.f32 %v1636_v15, %v965_v36  ;;  %v960_v41 = vadd.f32 %v959_v37, %v637_v38 }
 0x11d   : > { %1067 = vst [vmem:[%s1643_s28 + $0xe0] sm:$0xff] %v1035_v39  ;;  %v1038_v42 = vmax.f32 %v1006_v40, 0.0  ;;  %v1005_v43 = vadd.f32 %v1636_v15, %v960_v41 }
 0x11f   : > { %1070 = vst [vmem:[%s1643_s28 + $0xf8] sm:$0xff] %v1038_v42  ;;  %v1037_v44 = vmax.f32 %v1005_v43, 0.0 }
 0x121   : > { %1069 = vst [vmem:[%s1643_s28 + $0xf0] sm:$0xff] %v1037_v44 }
 0x122 PF: > { %s15_s18 = sadd.s32 1, %s1421_s18  }
 0x123   : > { %p12_p4 = scmp.ge.s32.totalorder %s15_s18, 4  }
 0x125   :  { %14 = sbr.rel (!%p12_p4) target bundleno = 1 (0x1), region = 73 }

</bundles_post_ra>
